<compile_context>
chip_gen: v7x
topology: tpu7x:2x2x1
jax: 0.10.0
libtpu: 0.0.40
codegen_flags: <defaults>
</compile_context>

<pallas_src>
import jax
import jax.numpy as jnp
from jax.experimental import pallas as pl
from jax.experimental.pallas import tpu as pltpu

_LANES = 512            # lane-dense last dim (multiple of 128)
_MAX_BLOCK_ROWS = 1024  # 1024 * 512 * 4 B = 2 MiB per block buffer


def _hardswish_kernel(x_ref, o_ref):
    x = x_ref[...]
    # hardswish = x * relu6(x + 3) / 6 ; use a reciprocal-constant multiply
    o_ref[...] = x * jnp.clip(x + 3.0, 0.0, 6.0) * (1.0 / 6.0)


def hardswish_forward(x):
    """Elementwise hardswish for an arbitrary-shape tensor (NCHW in the test)."""
    orig_shape = x.shape
    orig_dtype = x.dtype
    n = x.size

    # Flatten and compute in f32.
    flat = x.reshape(-1).astype(jnp.float32)

    rows = -(-n // _LANES)                          # ceil(n / lanes)
    rows_pad8 = -(-rows // 8) * 8                   # sublane multiple of 8
    block_rows = min(_MAX_BLOCK_ROWS, rows_pad8)    # block rows (multiple of 8)
    rows_padded = -(-rows_pad8 // block_rows) * block_rows
    n_padded = rows_padded * _LANES

    if n_padded != n:
        flat = jnp.pad(flat, (0, n_padded - n))     # hardswish(0) == 0, harmless
    x2d = flat.reshape(rows_padded, _LANES)

    grid = (rows_padded // block_rows,)

    out2d = pl.pallas_call(
        _hardswish_kernel,
        out_shape=jax.ShapeDtypeStruct((rows_padded, _LANES), jnp.float32),
        grid_spec=pltpu.PrefetchScalarGridSpec(
            num_scalar_prefetch=0,
            grid=grid,
            in_specs=[pl.BlockSpec((block_rows, _LANES), lambda i: (i, 0))],
            out_specs=pl.BlockSpec((block_rows, _LANES), lambda i: (i, 0)),
        ),
        compiler_params=pltpu.CompilerParams(
            dimension_semantics=("parallel",)),
    )(x2d)

    out = out2d.reshape(-1)[:n].reshape(orig_shape)
    return out.astype(orig_dtype)


if __name__ == "__main__":
    # small shapes consistent with the module (elementwise on NCHW activations)
    B, C, H, W = 2, 4, 16, 16
    key = jax.random.PRNGKey(0)
    x = jax.random.normal(key, (B, C, H, W), dtype=jnp.float32) * 3.0

    out = hardswish_forward(x)
    out = jax.block_until_ready(out)

    # pure-JAX reference: x * relu6(x + 3) / 6
    ref = x * jnp.clip(x + 3.0, 0.0, 6.0) / 6.0
    assert out.shape == ref.shape, "shape mismatch vs reference"
    assert jnp.allclose(out, ref, atol=1e-6, rtol=1e-6), "mismatch vs reference"

    print("KERNEL_OK")
</pallas_src>

<mosaic_0001>
module attributes {stable_mosaic.version = 11 : i64} {
  func.func @_hardswish_kernel(%arg0: i32, %arg1: memref<8x512xf32, #tpu.memory_space<vmem>>, %arg2: memref<8x512xf32, #tpu.memory_space<vmem>>) attributes {dimension_semantics = [#tpu.dimension_semantics<parallel>], iteration_bounds = array<i64: 1>, scalar_prefetch = 0 : i64, scratch_operands = 0 : i64, tpu.core_type = #tpu.core_type<tc>, window_params = [{transform_indices = @transform_0, window_bounds = array<i64: 8, 512>}, {transform_indices = @transform_1, window_bounds = array<i64: 8, 512>}]} {
    %c0 = arith.constant 0 : index
    %c0_0 = arith.constant 0 : index
    %0 = vector.load %arg1[%c0, %c0_0] : memref<8x512xf32, #tpu.memory_space<vmem>>, vector<8x512xf32>
    %cst = arith.constant 3.000000e+00 : f32
    %1 = vector.broadcast %cst : f32 to vector<8x512xf32>
    %2 = arith.addf %0, %1 : vector<8x512xf32>
    %cst_1 = arith.constant 0.000000e+00 : f32
    %cst_2 = arith.constant 6.000000e+00 : f32
    %3 = vector.broadcast %cst_1 : f32 to vector<8x512xf32>
    %4 = arith.maximumf %3, %2 : vector<8x512xf32>
    %5 = vector.broadcast %cst_2 : f32 to vector<8x512xf32>
    %6 = arith.minimumf %5, %4 : vector<8x512xf32>
    %7 = arith.mulf %0, %6 : vector<8x512xf32>
    %cst_3 = arith.constant 0.166666672 : f32
    %8 = vector.broadcast %cst_3 : f32 to vector<8x512xf32>
    %9 = arith.mulf %7, %8 : vector<8x512xf32>
    %c0_4 = arith.constant 0 : index
    %c0_5 = arith.constant 0 : index
    %10 = vector.load %arg2[%c0_4, %c0_5] : memref<8x512xf32, #tpu.memory_space<vmem>>, vector<8x512xf32>
    tpu.vector_store %arg2[%c0_4, %c0_5], %9 {strides = array<i32>} : memref<8x512xf32, #tpu.memory_space<vmem>>, vector<8x512xf32>,
    return
  }
  func.func @transform_0(%arg0: i32) -> (i32, i32) {
    %c0_i32 = arith.constant 0 : i32
    %c0_i32_0 = arith.constant 0 : i32
    return %arg0, %c0_i32 : i32, i32
  }
  func.func @transform_1(%arg0: i32) -> (i32, i32) {
    %c0_i32 = arith.constant 0 : i32
    %c0_i32_0 = arith.constant 0 : i32
    return %arg0, %c0_i32 : i32, i32
  }
}

</mosaic_0001>

<bundles_post_ra>
// kernel: tpu_custom_call.1
= control target key start
LH: loop header
LB: loop body
LE: loop exit
PB: predicated region body
PF: predicated region fallthrough
CT: control target
= control target key end

     0   :  { %6 = vsyncpa [#allocation3], 0  ;;  %s150_s0 = inlined_call_operand.hbm [shape: f32[8,512], index: 0, kind: input, shape index: {}]   ;;  %s151_s1 = inlined_call_operand.hbm [shape: f32[8,512], index: 1, kind: output, shape index: {}]  }
   0x1   :  { %7 = vsyncpa [#allocation4], 0  ;;  %s114_s6 = smov [#allocation2]   ;;  %s66_s10 = scalar_lea.hbm %s150_s0, 512 }
   0x2   :  { %s14_s7 = sshll.u32 %s114_s6, 4  ;;  %p67_p0 = scmp.ne.s32.totalorder %s150_s0, %s66_s10  ;;  %s15_s7 = int_to_ptr.vmem [resolvable:$true] %s14_s7 }
   0x3   :  { %p70_p1 = scmp.lt.u32.totalorder %s66_s10, %s150_s0 }
   0x5   :  { %p72_p2 = pnand %p70_p1, %p67_p0 }
   0x7   :  { %75 = shalt.err (!%p72_p2)
}
   0x8   :  { %s76_s15 = scalar_lea.vmem %s15_s7, 512  ;;  %p81_p4 = scmp.lt.s32.totalorder %s15_s7, %s15_s7 }
   0x9   :  { %p77_p3 = scmp.ne.s32.totalorder %s15_s7, %s76_s15  ;;  %p82_p5 = scmp.lt.s32.totalorder %s76_s15, %s76_s15 }
   0xb   :  { %p83_p6 = por %p82_p5, %p81_p4 }
   0xd   :  { %p84_p7 = pnand %p83_p6, %p77_p3 }
   0xf   :  { %87 = shalt.err (!%p84_p7)
}
  0x10   :  { %17 = dma.hbm_to_vmem [thread:$0]  %s150_s0, 512, %s15_s7, [#allocation3]  }
  0x11   :  { %110 = dma.done.wait [#allocation3], 512  }
  0x12   :  { %111 = vsyncadd [#allocation3], 4294966784  ;;  %v21_v0 = vld [vmem:[#allocation2] sm:$0xff]  ;;  %v22_v1 = vld [vmem:[#allocation2 + $0x8] sm:$0xff]  ;;  %s115_s0 = smov [#allocation5]  }
  0x13   :  { %v23_v2 = vld [vmem:[#allocation2 + $0x10] sm:$0xff]  ;;  %v25_v3 = vadd.f32 3.0, %v21_v0  ;;  %v26_v4 = vadd.f32 3.0, %v22_v1  ;;  %v24_v6 = vld [vmem:[#allocation2 + $0x18] sm:$0xff]  ;;  %s55_s18 = sshll.u32 %s115_s0, 4  ;;  %s56_s18 = int_to_ptr.vmem [resolvable:$true] %s55_s18 }
  0x14   :  { %v27_v5 = vadd.f32 3.0, %v23_v2  ;;  %v28_v7 = vadd.f32 3.0, %v24_v6  ;;  %s88_s19 = scalar_lea.vmem %s56_s18, 512  ;;  %p93_p9 = scmp.lt.s32.totalorder %s56_s18, %s56_s18 }
  0x15   :  { %v29_v8 = vmax.f32 %v25_v3, 0.0  ;;  %v30_v9 = vmax.f32 %v26_v4, 0.0  ;;  %p89_p8 = scmp.ne.s32.totalorder %s56_s18, %s88_s19  ;;  %p94_p10 = scmp.lt.s32.totalorder %s88_s19, %s88_s19 }
  0x16   :  { %v31_v10 = vmax.f32 %v27_v5, 0.0  ;;  %v32_v11 = vmax.f32 %v28_v7, 0.0 }
  0x17   :  { %v33_v12 = vmin.f32 %v29_v8, 6.0  ;;  %v34_v13 = vmin.f32 %v30_v9, 6.0  ;;  %p95_p11 = por %p94_p10, %p93_p9 }
  0x18   :  { %v35_v14 = vmin.f32 %v31_v10, 6.0  ;;  %v36_v15 = vmin.f32 %v32_v11, 6.0 }
  0x19   :  { %v37_v16 = vmul.f32 %v33_v12, %v21_v0  ;;  %v38_v17 = vmul.f32 %v34_v13, %v22_v1  ;;  %p96_p12 = pnand %p95_p11, %p89_p8 }
  0x1a   :  { %v39_v18 = vmul.f32 %v35_v14, %v23_v2  ;;  %v40_v19 = vmul.f32 %v36_v15, %v24_v6 }
  0x1b   :  { %v41_v20 = vmul.f32 0.16666667, %v37_v16  ;;  %v42_v21 = vmul.f32 0.16666667, %v38_v17 }
  0x1c   :  { %v43_v22 = vmul.f32 0.16666667, %v39_v18  ;;  %v44_v23 = vmul.f32 0.16666667, %v40_v19 }
  0x1d   :  { %45 = vst [vmem:[#allocation5] sm:$0xff] %v41_v20  ;;  %46 = vst [vmem:[#allocation5 + $0x8] sm:$0xff] %v42_v21 }
  0x1e   :  { %47 = vst [vmem:[#allocation5 + $0x10] sm:$0xff] %v43_v22  ;;  %48 = vst [vmem:[#allocation5 + $0x18] sm:$0xff] %v44_v23 }
  0x1f   :  { %99 = shalt.err (!%p96_p12)
}
  0x20   :  { %s100_s22 = scalar_lea.hbm %s151_s1, 512 }
  0x21   :  { %p101_p13 = scmp.ne.s32.totalorder %s151_s1, %s100_s22  ;;  %p104_p0 = scmp.lt.u32.totalorder %s100_s22, %s151_s1 }
  0x23   :  { %p106_p1 = pnand %p104_p0, %p101_p13 }
  0x25   :  { %109 = shalt.err (!%p106_p1)
}
  0x26   :  { %58 = dma.vmem_to_hbm [thread:$0]  %s56_s18, 512, %s151_s1, [#allocation4]  }
  0x27   :  { %112 = dma.done.wait [#allocation4], 512  }
  0x28   :  { %113 = vsyncadd [#allocation4], 4294966784 }
  0x29   :  { %62 = vsyncpa [#allocation3], 1 }
  0x2a   :  { %63 = vsyncpa [#allocation4], 1 }

</bundles_post_ra>
